<compile_context>
chip_gen: v7x
topology: tpu7x:2x2x1
jax: 0.10.0
libtpu: 0.0.40
codegen_flags: <defaults>
</compile_context>

<pallas_src>
import functools

import jax
import jax.numpy as jnp
from jax import lax
from jax.experimental import pallas as pl
from jax.experimental.pallas import tpu as pltpu


def _group_avg(v, *, num_groups, cout, inv_count):
    """Per-channel sums (Cout, 1) -> per-channel broadcast of the group mean."""
    cg = cout // num_groups
    if cg == 1:                      # one channel per group
        return v * inv_count
    if num_groups == 1:              # single group: combine all channels (sublane reduce)
        tot = jnp.sum(v, axis=0, keepdims=True)                   # (1, 1)
        return jnp.broadcast_to(tot, (cout, 1)) * inv_count
    if cg == 2:                      # StandardBlock case (Cout even): adjacent channel pairs
        up = jnp.concatenate([v[1:, :], v[:1, :]], axis=0)        # channel c+1 (wraps)
        down = jnp.concatenate([v[-1:, :], v[:-1, :]], axis=0)    # channel c-1 (wraps)
        even = (lax.broadcasted_iota(jnp.int32, (cout, 1), 0) & 1) == 0
        return (v + jnp.where(even, up, down)) * inv_count
    # generic fallback (not reachable for this module's group structure)
    g = jnp.sum(v.reshape(num_groups, cg), axis=1, keepdims=True)
    return jnp.broadcast_to(g, (num_groups, cg)).reshape(cout, 1) * inv_count


def _noninv_kernel(x_ref, w_ref, m_ref, gamma_ref, beta_ref, o_ref, *,
                   H, W, Cin, Cout, k, pad, num_groups, neg_slope, eps, bt):
    # x_ref    : (bt, Cin, L)        flat H-padded input rows (bf16), L = (H + 2*pad + 2) * W
    # w_ref    : (Cout, k*k*Cin)     conv weight, tap-major columns (bf16)
    # m_ref    : (k, H*W)            per-dx column-validity masks (bf16, {0,1})
    # gamma_ref/beta_ref : (Cout, 1) GroupNorm affine (f32)
    # o_ref    : (bt, Cout, H*W)     f32 output (lane-dense)
    HW = H * W
    cg = Cout // num_groups
    inv_count = 1.0 / float(cg * HW)

    for bi in range(bt):                                   # static unroll over samples
        # ---- conv: build the im2col stack in vregs, one MXU matmul (K = k*k*Cin) ----
        pieces = []
        for dy in range(k):
            for dx in range(k):
                off = (dy + 1) * W + dx - pad              # compile-time lane offset
                win = x_ref[bi, :, off:off + HW]           # (Cin, HW)
                if dx != pad:                              # zero cols that wrapped a row
                    win = win * m_ref[dx:dx + 1, :]
                pieces.append(win)
        xcol = jnp.concatenate(pieces, axis=0)             # (k*k*Cin, HW)
        y = jnp.dot(w_ref[...], xcol,
                    preferred_element_type=jnp.float32)    # (Cout, HW) f32 accumulate

        # ---- LeakyReLU (f32 on the VPU) ----
        y = jnp.where(y > 0, y, neg_slope * y)

        # ---- GroupNorm: two-pass (centered) stats per sample, per group ----
        s = jnp.sum(y, axis=1, keepdims=True)              # (Cout, 1) per-channel sums
        mean = _group_avg(s, num_groups=num_groups, cout=Cout, inv_count=inv_count)
        d = y - mean
        ssq = jnp.sum(d * d, axis=1, keepdims=True)        # (Cout, 1)
        var = _group_avg(ssq, num_groups=num_groups, cout=Cout, inv_count=inv_count)
        inv = lax.rsqrt(var + eps)
        out = d * (inv * gamma_ref[...]) + beta_ref[...]

        o_ref[bi] = out.astype(o_ref.dtype)


def _pick_batch_tile(n):
    # Fold batch into each grid step, but keep >= 2 grid steps so both v7x TensorCores
    # get work (v5e/v6e have a single TC and are indifferent).
    if n <= 2:
        return 1
    for bt in range(n // 2, 0, -1):
        if n % bt == 0:
            return bt
    return 1


def non_inv_block(x_nchw, conv_w, gamma, beta, *, k_size,
                  neg_slope=0.01, eps=1e-3, compute_dtype=jnp.bfloat16):
    """NonInvBlock forward. x_nchw: (N, Cin, H, W); conv_w: (Cout, Cin, k, k)."""
    N, Cin, H, W = x_nchw.shape
    Cout, cin_w, kh, kw = conv_w.shape
    assert cin_w == Cin and kh == k_size and kw == k_size
    k = k_size
    pad = k // 2
    HW = H * W

    # GroupNorm group structure (matches StandardBlock.__init__)
    norm_val = Cout // 2 if Cout % 2 == 0 else 1
    num_groups = max(1, norm_val)
    assert Cout % num_groups == 0, "GroupNorm groups must divide out_channels"
    assert pad <= W, "kernel too wide for this image width"

    bt = _pick_batch_tile(N)
    assert N % bt == 0

    # ---- glue (plain JAX): padding, flattening, parameter packing ----
    # Zero-pad H by (pad+1, pad+1) and flatten (H, W) onto lanes so every conv tap is a
    # contiguous compile-time lane-offset window of the flat buffer (the extra zero row on
    # each side keeps every window slice in bounds).
    # TODO(synk): the jnp.pad is one extra HBM round trip of x; for large H,W move the halo
    # zeroing into the kernel via a VMEM staging buffer + manual DMA.
    L = (H + 2 * pad + 2) * W
    x_flat = jnp.pad(x_nchw, ((0, 0), (0, 0), (pad + 1, pad + 1), (0, 0)))
    x_flat = x_flat.reshape(N, Cin, L).astype(compute_dtype)

    # Conv weight packed tap-major: column block t = dy*k+dx holds w[:, :, dy, dx].
    w_mat = jnp.transpose(conv_w, (0, 2, 3, 1)).reshape(Cout, k * k * Cin).astype(compute_dtype)

    # Per-tap column masks: zero window columns whose dx-shift crossed an image-row boundary.
    xcol_idx = jnp.arange(HW, dtype=jnp.int32) % W
    tap_mask = jnp.stack(
        [((xcol_idx + (dx - pad) >= 0) & (xcol_idx + (dx - pad) < W)) for dx in range(k)],
        axis=0).astype(compute_dtype)                                   # (k, HW)

    gamma2 = gamma.reshape(Cout, 1).astype(jnp.float32)
    beta2 = beta.reshape(Cout, 1).astype(jnp.float32)

    kernel = functools.partial(
        _noninv_kernel, H=H, W=W, Cin=Cin, Cout=Cout, k=k, pad=pad,
        num_groups=num_groups, neg_slope=neg_slope, eps=eps, bt=bt)

    out = pl.pallas_call(
        kernel,
        out_shape=jax.ShapeDtypeStruct((N, Cout, HW), jnp.float32),
        grid_spec=pltpu.PrefetchScalarGridSpec(
            num_scalar_prefetch=0,
            grid=(N // bt,),
            in_specs=[
                pl.BlockSpec((bt, Cin, L), lambda b: (b, 0, 0)),
                pl.BlockSpec((Cout, k * k * Cin), lambda b: (0, 0)),
                pl.BlockSpec((k, HW), lambda b: (0, 0)),
                pl.BlockSpec((Cout, 1), lambda b: (0, 0)),
                pl.BlockSpec((Cout, 1), lambda b: (0, 0)),
            ],
            out_specs=pl.BlockSpec((bt, Cout, HW), lambda b: (b, 0, 0)),
        ),
        compiler_params=pltpu.CompilerParams(
            dimension_semantics=("parallel",),
            # blocks here are KB-scale; an explicit, modest limit stays well inside
            # v7x's 64 MiB physical VMEM while raising v5e's 16 MiB default.
            vmem_limit_bytes=32 * 1024 * 1024),
    )(x_flat, w_mat, tap_mask, gamma2, beta2)

    return out.reshape(N, Cout, H, W)           # lane-dense output: reshape only, no transpose


def _reference(x, w, gamma, beta, *, k_size, neg_slope=0.01, eps=1e-3):
    """Pure-JAX reference for the same forward (NCHW)."""
    p = k_size // 2
    y = lax.conv_general_dilated(
        x, w, window_strides=(1, 1), padding=[(p, p), (p, p)],
        dimension_numbers=('NCHW', 'OIHW', 'NCHW'))
    y = jnp.where(y > 0, y, neg_slope * y)
    N, C, H, W = y.shape
    norm_val = C // 2 if C % 2 == 0 else 1
    G = max(1, norm_val)
    yg = y.reshape(N, G, C // G, H, W)
    m = yg.mean(axis=(2, 3, 4), keepdims=True)
    v = yg.var(axis=(2, 3, 4), keepdims=True)
    yn = ((yg - m) / jnp.sqrt(v + eps)).reshape(N, C, H, W)
    return yn * gamma[None, :, None, None] + beta[None, :, None, None]


if __name__ == "__main__":
    # Shapes consistent with NonInvBlock(channels=4, k_size=3): channels even.
    N, C, H, W = 2, 4, 16, 16
    K = 3
    Cout = C  # out_channels=None -> out_channels == channels

    key = jax.random.PRNGKey(0)
    kx, kw, kg, kb = jax.random.split(key, 4)
    x = jax.random.normal(kx, (N, C, H, W), dtype=jnp.float32)
    conv_w = jax.random.normal(kw, (Cout, C, K, K), dtype=jnp.float32) * (1.0 / (C * K * K)) ** 0.5
    gamma = 1.0 + 0.1 * jax.random.normal(kg, (Cout,), dtype=jnp.float32)
    beta = 0.1 * jax.random.normal(kb, (Cout,), dtype=jnp.float32)

    out = non_inv_block(x, conv_w, gamma, beta, k_size=K)
    out = jax.block_until_ready(out)
    assert out.shape == (N, Cout, H, W)

    # Reference uses the same bf16-rounded conv inputs that the kernel feeds the MXU.
    x_q = x.astype(jnp.bfloat16).astype(jnp.float32)
    w_q = conv_w.astype(jnp.bfloat16).astype(jnp.float32)
    ref = _reference(x_q, w_q, gamma, beta, k_size=K)
    max_err = float(jnp.max(jnp.abs(out - ref)))
    assert jnp.allclose(out, ref, rtol=5e-3, atol=5e-3), max_err

    print("KERNEL_OK")
</pallas_src>

<mosaic_0001>
module attributes {stable_mosaic.version = 11 : i64} {
  func.func @_noninv_kernel(%arg0: i32, %arg1: memref<1x4x320xbf16, #tpu.memory_space<vmem>>, %arg2: memref<4x36xbf16, #tpu.memory_space<vmem>>, %arg3: memref<3x256xbf16, #tpu.memory_space<vmem>>, %arg4: memref<4x1xf32, #tpu.memory_space<vmem>>, %arg5: memref<4x1xf32, #tpu.memory_space<vmem>>, %arg6: memref<1x4x256xf32, #tpu.memory_space<vmem>>) attributes {dimension_semantics = [#tpu.dimension_semantics<parallel>], iteration_bounds = array<i64: 2>, scalar_prefetch = 0 : i64, scratch_operands = 0 : i64, tpu.core_type = #tpu.core_type<tc>, window_params = [{transform_indices = @transform_0, window_bounds = array<i64: 1, 4, 320>}, {pipeline_mode = #tpu.pipeline_mode<synchronous>, transform_indices = @transform_1, window_bounds = array<i64: 4, 36>}, {pipeline_mode = #tpu.pipeline_mode<synchronous>, transform_indices = @transform_2, window_bounds = array<i64: 3, 256>}, {pipeline_mode = #tpu.pipeline_mode<synchronous>, transform_indices = @transform_3, window_bounds = array<i64: 4, 1>}, {pipeline_mode = #tpu.pipeline_mode<synchronous>, transform_indices = @transform_4, window_bounds = array<i64: 4, 1>}, {transform_indices = @transform_5, window_bounds = array<i64: 1, 4, 256>}]} {
    %c0 = arith.constant 0 : index
    %c0_0 = arith.constant 0 : index
    %c15 = arith.constant 15 : index
    %0 = vector.load %arg1[%c0, %c0_0, %c15] : memref<1x4x320xbf16, #tpu.memory_space<vmem>>, vector<1x4x256xbf16>
    %1 = vector.shape_cast %0 : vector<1x4x256xbf16> to vector<4x256xbf16>
    %c0_1 = arith.constant 0 : index
    %c0_2 = arith.constant 0 : index
    %2 = vector.load %arg3[%c0_1, %c0_2] : memref<3x256xbf16, #tpu.memory_space<vmem>>, vector<1x256xbf16>
    %3 = vector.broadcast %2 : vector<1x256xbf16> to vector<4x256xbf16>
    %4 = arith.mulf %1, %3 : vector<4x256xbf16>
    %c0_3 = arith.constant 0 : index
    %c0_4 = arith.constant 0 : index
    %c16 = arith.constant 16 : index
    %5 = vector.load %arg1[%c0_3, %c0_4, %c16] : memref<1x4x320xbf16, #tpu.memory_space<vmem>>, vector<1x4x256xbf16>
    %6 = vector.shape_cast %5 : vector<1x4x256xbf16> to vector<4x256xbf16>
    %c0_5 = arith.constant 0 : index
    %c0_6 = arith.constant 0 : index
    %c17 = arith.constant 17 : index
    %7 = vector.load %arg1[%c0_5, %c0_6, %c17] : memref<1x4x320xbf16, #tpu.memory_space<vmem>>, vector<1x4x256xbf16>
    %8 = vector.shape_cast %7 : vector<1x4x256xbf16> to vector<4x256xbf16>
    %c2 = arith.constant 2 : index
    %c0_7 = arith.constant 0 : index
    %9 = vector.load %arg3[%c2, %c0_7] : memref<3x256xbf16, #tpu.memory_space<vmem>>, vector<1x256xbf16>
    %10 = vector.broadcast %9 : vector<1x256xbf16> to vector<4x256xbf16>
    %11 = arith.mulf %8, %10 : vector<4x256xbf16>
    %c0_8 = arith.constant 0 : index
    %c0_9 = arith.constant 0 : index
    %c31 = arith.constant 31 : index
    %12 = vector.load %arg1[%c0_8, %c0_9, %c31] : memref<1x4x320xbf16, #tpu.memory_space<vmem>>, vector<1x4x256xbf16>
    %13 = vector.shape_cast %12 : vector<1x4x256xbf16> to vector<4x256xbf16>
    %c0_10 = arith.constant 0 : index
    %c0_11 = arith.constant 0 : index
    %14 = vector.load %arg3[%c0_10, %c0_11] : memref<3x256xbf16, #tpu.memory_space<vmem>>, vector<1x256xbf16>
    %15 = vector.broadcast %14 : vector<1x256xbf16> to vector<4x256xbf16>
    %16 = arith.mulf %13, %15 : vector<4x256xbf16>
    %c0_12 = arith.constant 0 : index
    %c0_13 = arith.constant 0 : index
    %c32 = arith.constant 32 : index
    %17 = vector.load %arg1[%c0_12, %c0_13, %c32] : memref<1x4x320xbf16, #tpu.memory_space<vmem>>, vector<1x4x256xbf16>
    %18 = vector.shape_cast %17 : vector<1x4x256xbf16> to vector<4x256xbf16>
    %c0_14 = arith.constant 0 : index
    %c0_15 = arith.constant 0 : index
    %c33 = arith.constant 33 : index
    %19 = vector.load %arg1[%c0_14, %c0_15, %c33] : memref<1x4x320xbf16, #tpu.memory_space<vmem>>, vector<1x4x256xbf16>
    %20 = vector.shape_cast %19 : vector<1x4x256xbf16> to vector<4x256xbf16>
    %c2_16 = arith.constant 2 : index
    %c0_17 = arith.constant 0 : index
    %21 = vector.load %arg3[%c2_16, %c0_17] : memref<3x256xbf16, #tpu.memory_space<vmem>>, vector<1x256xbf16>
    %22 = vector.broadcast %21 : vector<1x256xbf16> to vector<4x256xbf16>
    %23 = arith.mulf %20, %22 : vector<4x256xbf16>
    %c0_18 = arith.constant 0 : index
    %c0_19 = arith.constant 0 : index
    %c47 = arith.constant 47 : index
    %24 = vector.load %arg1[%c0_18, %c0_19, %c47] : memref<1x4x320xbf16, #tpu.memory_space<vmem>>, vector<1x4x256xbf16>
    %25 = vector.shape_cast %24 : vector<1x4x256xbf16> to vector<4x256xbf16>
    %c0_20 = arith.constant 0 : index
    %c0_21 = arith.constant 0 : index
    %26 = vector.load %arg3[%c0_20, %c0_21] : memref<3x256xbf16, #tpu.memory_space<vmem>>, vector<1x256xbf16>
    %27 = vector.broadcast %26 : vector<1x256xbf16> to vector<4x256xbf16>
    %28 = arith.mulf %25, %27 : vector<4x256xbf16>
    %c0_22 = arith.constant 0 : index
    %c0_23 = arith.constant 0 : index
    %c48 = arith.constant 48 : index
    %29 = vector.load %arg1[%c0_22, %c0_23, %c48] : memref<1x4x320xbf16, #tpu.memory_space<vmem>>, vector<1x4x256xbf16>
    %30 = vector.shape_cast %29 : vector<1x4x256xbf16> to vector<4x256xbf16>
    %c0_24 = arith.constant 0 : index
    %c0_25 = arith.constant 0 : index
    %c49 = arith.constant 49 : index
    %31 = vector.load %arg1[%c0_24, %c0_25, %c49] : memref<1x4x320xbf16, #tpu.memory_space<vmem>>, vector<1x4x256xbf16>
    %32 = vector.shape_cast %31 : vector<1x4x256xbf16> to vector<4x256xbf16>
    %c2_26 = arith.constant 2 : index
    %c0_27 = arith.constant 0 : index
    %33 = vector.load %arg3[%c2_26, %c0_27] : memref<3x256xbf16, #tpu.memory_space<vmem>>, vector<1x256xbf16>
    %34 = vector.broadcast %33 : vector<1x256xbf16> to vector<4x256xbf16>
    %35 = arith.mulf %32, %34 : vector<4x256xbf16>
    %36 = tpu.concatenate %4, %6, %11, %16, %18, %23, %28, %30, %35 in 0 : vector<4x256xbf16>, vector<4x256xbf16>, vector<4x256xbf16>, vector<4x256xbf16>, vector<4x256xbf16>, vector<4x256xbf16>, vector<4x256xbf16>, vector<4x256xbf16>, vector<4x256xbf16> -> vector<36x256xbf16>
    %c0_28 = arith.constant 0 : index
    %c0_29 = arith.constant 0 : index
    %37 = vector.load %arg2[%c0_28, %c0_29] : memref<4x36xbf16, #tpu.memory_space<vmem>>, vector<4x36xbf16>
    %cst = arith.constant dense<0.000000e+00> : vector<4x256xf32>
    %38 = tpu.matmul %37, %36, %cst {dimension_numbers = #tpu.dot_dimension_numbers<[1], [0], [0], [1], [0, 0, 1, 1], [], []>} : vector<4x36xbf16>, vector<36x256xbf16>, vector<4x256xf32> -> vector<4x256xf32>
    %cst_30 = arith.constant 0.000000e+00 : f32
    %39 = vector.broadcast %cst_30 : f32 to vector<4x256xf32>
    %40 = arith.cmpf ogt, %38, %39 : vector<4x256xf32>
    %cst_31 = arith.constant 0.00999999977 : f32
    %41 = vector.broadcast %cst_31 : f32 to vector<4x256xf32>
    %42 = arith.mulf %41, %38 : vector<4x256xf32>
    %43 = arith.select %40, %38, %42 : vector<4x256xi1>, vector<4x256xf32>
    %cst_32 = arith.constant dense<0.000000e+00> : vector<4xf32>
    %44 = vector.multi_reduction <add>, %43, %cst_32 [1] : vector<4x256xf32> to vector<4xf32>
    %45 = vector.shape_cast %44 : vector<4xf32> to vector<4x1xf32>
    %46 = vector.extract_strided_slice %45 {offsets = [1, 0], sizes = [3, 1], strides = [1, 1]} : vector<4x1xf32> to vector<3x1xf32>
    %47 = vector.extract_strided_slice %45 {offsets = [0, 0], sizes = [1, 1], strides = [1, 1]} : vector<4x1xf32> to vector<1x1xf32>
    %48 = tpu.concatenate %46, %47 in 0 : vector<3x1xf32>, vector<1x1xf32> -> vector<4x1xf32>
    %49 = vector.extract_strided_slice %45 {offsets = [3, 0], sizes = [1, 1], strides = [1, 1]} : vector<4x1xf32> to vector<1x1xf32>
    %50 = vector.extract_strided_slice %45 {offsets = [0, 0], sizes = [3, 1], strides = [1, 1]} : vector<4x1xf32> to vector<3x1xf32>
    %51 = tpu.concatenate %49, %50 in 0 : vector<1x1xf32>, vector<3x1xf32> -> vector<4x1xf32>
    %52 = tpu.iota {dimensions = array<i32: 0>} : vector<4x1xi32>
    %c1_i32 = arith.constant 1 : i32
    %53 = vector.broadcast %c1_i32 : i32 to vector<4x1xi32>
    %54 = arith.andi %52, %53 : vector<4x1xi32>
    %c0_i32 = arith.constant 0 : i32
    %55 = vector.broadcast %c0_i32 : i32 to vector<4x1xi32>
    %56 = arith.cmpi eq, %54, %55 : vector<4x1xi32>
    %57 = arith.select %56, %48, %51 : vector<4x1xi1>, vector<4x1xf32>
    %58 = arith.addf %45, %57 : vector<4x1xf32>
    %cst_33 = arith.constant 0.001953125 : f32
    %59 = vector.broadcast %cst_33 : f32 to vector<4x1xf32>
    %60 = arith.mulf %58, %59 : vector<4x1xf32>
    %61 = vector.broadcast %60 : vector<4x1xf32> to vector<4x256xf32>
    %62 = arith.subf %43, %61 : vector<4x256xf32>
    %63 = arith.mulf %62, %62 : vector<4x256xf32>
    %cst_34 = arith.constant dense<0.000000e+00> : vector<4xf32>
    %64 = vector.multi_reduction <add>, %63, %cst_34 [1] : vector<4x256xf32> to vector<4xf32>
    %65 = vector.shape_cast %64 : vector<4xf32> to vector<4x1xf32>
    %66 = vector.extract_strided_slice %65 {offsets = [1, 0], sizes = [3, 1], strides = [1, 1]} : vector<4x1xf32> to vector<3x1xf32>
    %67 = vector.extract_strided_slice %65 {offsets = [0, 0], sizes = [1, 1], strides = [1, 1]} : vector<4x1xf32> to vector<1x1xf32>
    %68 = tpu.concatenate %66, %67 in 0 : vector<3x1xf32>, vector<1x1xf32> -> vector<4x1xf32>
    %69 = vector.extract_strided_slice %65 {offsets = [3, 0], sizes = [1, 1], strides = [1, 1]} : vector<4x1xf32> to vector<1x1xf32>
    %70 = vector.extract_strided_slice %65 {offsets = [0, 0], sizes = [3, 1], strides = [1, 1]} : vector<4x1xf32> to vector<3x1xf32>
    %71 = tpu.concatenate %69, %70 in 0 : vector<1x1xf32>, vector<3x1xf32> -> vector<4x1xf32>
    %72 = tpu.iota {dimensions = array<i32: 0>} : vector<4x1xi32>
    %c1_i32_35 = arith.constant 1 : i32
    %73 = vector.broadcast %c1_i32_35 : i32 to vector<4x1xi32>
    %74 = arith.andi %72, %73 : vector<4x1xi32>
    %c0_i32_36 = arith.constant 0 : i32
    %75 = vector.broadcast %c0_i32_36 : i32 to vector<4x1xi32>
    %76 = arith.cmpi eq, %74, %75 : vector<4x1xi32>
    %77 = arith.select %76, %68, %71 : vector<4x1xi1>, vector<4x1xf32>
    %78 = arith.addf %65, %77 : vector<4x1xf32>
    %cst_37 = arith.constant 0.001953125 : f32
    %79 = vector.broadcast %cst_37 : f32 to vector<4x1xf32>
    %80 = arith.mulf %78, %79 : vector<4x1xf32>
    %cst_38 = arith.constant 1.000000e-03 : f32
    %81 = vector.broadcast %cst_38 : f32 to vector<4x1xf32>
    %82 = arith.addf %80, %81 : vector<4x1xf32>
    %83 = math.rsqrt %82 : vector<4x1xf32>
    %c0_39 = arith.constant 0 : index
    %c0_40 = arith.constant 0 : index
    %84 = vector.load %arg4[%c0_39, %c0_40] : memref<4x1xf32, #tpu.memory_space<vmem>>, vector<4x1xf32>
    %85 = arith.mulf %83, %84 : vector<4x1xf32>
    %86 = vector.broadcast %85 : vector<4x1xf32> to vector<4x256xf32>
    %87 = arith.mulf %62, %86 : vector<4x256xf32>
    %c0_41 = arith.constant 0 : index
    %c0_42 = arith.constant 0 : index
    %88 = vector.load %arg5[%c0_41, %c0_42] : memref<4x1xf32, #tpu.memory_space<vmem>>, vector<4x1xf32>
    %89 = vector.broadcast %88 : vector<4x1xf32> to vector<4x256xf32>
    %90 = arith.addf %87, %89 : vector<4x256xf32>
    %c0_43 = arith.constant 0 : index
    %c0_44 = arith.constant 0 : index
    %c0_45 = arith.constant 0 : index
    %91 = vector.load %arg6[%c0_43, %c0_44, %c0_45] : memref<1x4x256xf32, #tpu.memory_space<vmem>>, vector<1x4x256xf32>
    %92 = vector.shape_cast %91 : vector<1x4x256xf32> to vector<4x256xf32>
    %93 = vector.shape_cast %90 : vector<4x256xf32> to vector<1x4x256xf32>
    tpu.vector_store %arg6[%c0_43, %c0_44, %c0_45], %93 {strides = array<i32>} : memref<1x4x256xf32, #tpu.memory_space<vmem>>, vector<1x4x256xf32>,
    return
  }
  func.func @transform_0(%arg0: i32) -> (i32, i32, i32) {
    %c0_i32 = arith.constant 0 : i32
    %c0_i32_0 = arith.constant 0 : i32
    %c0_i32_1 = arith.constant 0 : i32
    return %arg0, %c0_i32, %c0_i32_0 : i32, i32, i32
  }
  func.func @transform_1(%arg0: i32) -> (i32, i32) {
    %c0_i32 = arith.constant 0 : i32
    %c0_i32_0 = arith.constant 0 : i32
    %c0_i32_1 = arith.constant 0 : i32
    return %c0_i32, %c0_i32_0 : i32, i32
  }
  func.func @transform_2(%arg0: i32) -> (i32, i32) {
    %c0_i32 = arith.constant 0 : i32
    %c0_i32_0 = arith.constant 0 : i32
    %c0_i32_1 = arith.constant 0 : i32
    return %c0_i32, %c0_i32_0 : i32, i32
  }
  func.func @transform_3(%arg0: i32) -> (i32, i32) {
    %c0_i32 = arith.constant 0 : i32
    %c0_i32_0 = arith.constant 0 : i32
    %c0_i32_1 = arith.constant 0 : i32
    return %c0_i32, %c0_i32_0 : i32, i32
  }
  func.func @transform_4(%arg0: i32) -> (i32, i32) {
    %c0_i32 = arith.constant 0 : i32
    %c0_i32_0 = arith.constant 0 : i32
    %c0_i32_1 = arith.constant 0 : i32
    return %c0_i32, %c0_i32_0 : i32, i32
  }
  func.func @transform_5(%arg0: i32) -> (i32, i32, i32) {
    %c0_i32 = arith.constant 0 : i32
    %c0_i32_0 = arith.constant 0 : i32
    %c0_i32_1 = arith.constant 0 : i32
    return %arg0, %c0_i32, %c0_i32_0 : i32, i32, i32
  }
}

</mosaic_0001>

<bundles_post_ra>
// kernel: tpu_custom_call.1
= control target key start
LH: loop header
LB: loop body
LE: loop exit
PB: predicated region body
PF: predicated region fallthrough
CT: control target
= control target key end

     0   :  { %10 = vsyncpa [#allocation3], 0  ;;  %s1378_s0 = inlined_call_operand.hbm [shape: bf16[2,4,320], index: 0, kind: input, shape index: {}]   ;;  %s1379_s1 = inlined_call_operand.vmem [shape: bf16[4,36], index: 1, kind: input, shape index: {}]   ;;  %s1380_s2 = inlined_call_operand.vmem [shape: bf16[3,256], index: 2, kind: input, shape index: {}]   ;;  %s1381_s3 = inlined_call_operand.vmem [shape: f32[4,1], index: 3, kind: input, shape index: {}]   ;;  %s1382_s4 = inlined_call_operand.vmem [shape: f32[4,1], index: 4, kind: input, shape index: {}]   ;;  %s1383_s5 = inlined_call_operand.hbm [shape: f32[2,4,256], index: 5, kind: output, shape index: {}]  }
   0x1   :  { %12 = vsyncpa [#allocation3 + $0x1], 0 }
   0x2   :  { %13 = vsyncpa [#allocation4], 0 }
   0x3   :  { %15 = vsyncpa [#allocation4 + $0x1], 0  ;;  %s1093_s18 = smov 0   ;;  %s1095_s19 = smov 0  }
   0x4   :  { %s1097_s20 = smov 0   ;;  %s1099_s21 = smov 0  }
   0x5 LB: > { %s1114_s22 = sadd.s32 4294967295, %s1042_s21   ;;  %s858_s23 = sadd.s32 4294967294, %s1042_s21   ;;  %s1042_s21 = sphi %s1099_s21, %s1399_s21   ;;  %s1038_s20 = sphi %s1097_s20, %s1398_s20   ;;  %s1034_s19 = sphi %s1095_s19, %s1397_s19   ;;  %s1030_s18 = sphi %s1093_s18, %s1396_s18  }
   0x6   : > { %s1118_s24 = sadd.s32 1, %s1042_s21   ;;  %s28_s25 = sadd.s32 1, %s1038_s20 }
   0x7   : > { %s25_s26 = ssub.s32 %s1042_s21, %s1118_s24  ;;  %p35_p0 = scmp.ne.s32.totalorder %s1038_s20, %s1034_s19 }
   0x8   : > { %p26_p1 = scmp.eq.s32.totalorder %s25_s26, 0  ;;  %p36_p2 = scmp.eq.s32.totalorder %s1042_s21, 0 }
   0x9   : > { %p41_p3 = scmp.ne.s32.totalorder %s1034_s19, %s1030_s18  ;;  %p42_p4 = scmp.eq.s32.totalorder %s1114_s22, 0 }
   0xa   : > { %s1130_s27 = scalar_select %p26_p1, %s1038_s20, %s28_s25  }
   0xb   : > { %p37_p5 = por %p36_p2, %p35_p0  ;;  %p1132_p6 = por %p42_p4, %p41_p3 }
   0xc   : > { %p149_p7 = scmp.eq.s32.totalorder %s1114_s22, 1  ;;  %p155_p8 = scmp.eq.s32.totalorder %s858_s23, 1 }
   0xd   : > { %p889_p10 = scmp.lt.s32.totalorder %s1042_s21, 2  ;;  %s187_s6 = sand.u32 1, %s1038_s20  }
   0xe   : > { %p1139_p11 = por %p149_p7, %p35_p0  ;;  %p1143_p12 = por %p155_p8, %p41_p3 }
   0xf   : > { %s875_s7 = smul.u32 96, %s1042_s21  ;;  %p1154_p13 = pnand %p889_p10, %p37_p5 }
  0x10   : > { %s1386_s29 = scalar_select %p1139_p11, 1, 0 }
  0x11   : > { %s1387_s30 = scalar_select %p1143_p12, 1, 0 }
  0x12   : > { %s874_s8 = smul.u32 6, %s187_s6  ;;  %s1152_s11 = scalar_lea.hbm %s1378_s0, %s875_s7 }
  0x13   : > { %s188_s15 = scalar_lea.sflag [#allocation3], %s187_s6  ;;  %s946_s16 = scalar_lea.hbm %s1152_s11, 96 }
  0x14   : > { %s191_s13 = scalar_lea.vmem [#allocation2], %s874_s8  ;;  %p947_p2 = scmp.ne.s32.totalorder %s1152_s11, %s946_s16 }
  0x15   : > { %s199_s14 = sshll.u32 %s191_s13, 4  ;;  %p948_p3 = pneg %p1154_p13  ;;  %s1159_s14 = int_to_ptr.vmem [resolvable:$true] %s199_s14 }
  0x16   : > { %s951_s25 = scalar_lea.hbm %s1378_s0, 192  ;;  %p952_p7 = scmp.lt.u32.totalorder %s1152_s11, %s1378_s0 }
  0x17   : > { %p949_p4 = pnand %p948_p3, %p947_p2  ;;  %p953_p8 = scmp.lt.u32.totalorder %s951_s25, %s946_s16 }
  0x18   : > { %p955_p9 = scmp.lt.u32.totalorder %s946_s16, %s1152_s11 }
  0x19   : > { %p950_p5 = pneg %p949_p4  ;;  %p954_p10 = por %p953_p8, %p952_p7 }
  0x1b   : > { %p956_p0 = por %p955_p9, %p954_p10 }
  0x1d   : > { %p957_p1 = pnand %p956_p0, %p950_p5 }
  0x1f   : > { %960 = shalt.err (!%p957_p1)
}
  0x20   : > { %s961_s6 = scalar_lea.vmem %s1159_s14, 96  ;;  %s1044_s8 = smov [#allocation2]  }
  0x21   : > { %p962_p2 = scmp.ne.s32.totalorder %s1159_s14, %s961_s6  ;;  %s966_s9 = sshll.u32 %s1044_s8, 4  ;;  %s967_s9 = int_to_ptr.vmem [resolvable:$false] %s966_s9 }
  0x22   : > { %s968_s10 = scalar_lea.vmem %s967_s9, 192  ;;  %p969_p11 = scmp.lt.s32.totalorder %s1159_s14, %s967_s9 }
  0x23   : > { %p964_p4 = pnand %p962_p2, %p948_p3  ;;  %p970_p7 = scmp.lt.s32.totalorder %s968_s10, %s961_s6 }
  0x25   : > { %p965_p12 = pneg %p964_p4  ;;  %p971_p8 = por %p970_p7, %p969_p11 }
  0x27   : > { %p972_p9 = pnand %p971_p8, %p965_p12 }
  0x29   : > { %975 = shalt.err (!%p972_p9)
}
  0x2a   : > { %884 = dma.hbm_to_vmem [thread:$0]  (!%p1154_p13), %s1152_s11, 96, %s1159_s14, %s188_s15  }
  0x2b   : > { %p1389_p0 = scmp.lt.s32.totalorder %s1042_s21, 3  ;;  %p1390_p1 = scmp.ge.s32.totalorder %s1042_s21, 1 }
  0x2d   : > { %p205_p3 = pnand %p1390_p1, %p1389_p0 }
  0x2e   : > { %s1192_s13 = sand.u32 (!%p205_p3), 1, %s1034_s19  }
  0x2f   : > { %208 = sbr.rel (%p205_p3) target bundleno = 1277 (0x4fd), region = 40  ;;  %s211_s17 = scalar_lea.sflag (!%p205_p3), [#allocation3], %s1192_s13 }
  0x30   : > { %s876_s16 = smul.u32 (!%p205_p3), 6, %s1192_s13 }
  0x32   : > { %s214_s23 = scalar_lea.vmem (!%p205_p3), [#allocation2], %s876_s16 }
  0x36   : > { %1021 = dma.done.wait (%p1132_p6), %s211_s17, 96  }
  0x37   : > { %1023 = vsyncadd (%p1132_p6), %s211_s17, 4294967200  ;;  %v256_v0 = vlaneseq  ;;  %v1045_v2 = vmov 1983009808   ;;  %v1214_v23 = vld [vmem:[%s214_s23] sm:$0x3f]  ;;  %s1046_s28 = smov 33  }
  0x38   : > { %v271_v3 = vunpack.c.l.s4 %v1045_v2  ;;  %v865_v5 = vld.sshfl [vmem:[%s1380_s2] sm:$0x22 pattern:$0x76325410]  ;;  %s1047_s25 = smov 17   ;;  %v371_v25 = vcombine.low %v1214_v23, %v1214_v23  ;;  %s1048_s26 = smov 47   ;;  %v450_v30 = vcombine.high %v1214_v23, %v1214_v23 }
  0x39   : > { %v1200_v1 = vshrl.u32 %v256_v0, 7  ;;  %v293_v8 = vcombine.high %v865_v5, %v865_v5  ;;  %v295_v9 = vpack.i.b16 %v865_v5, %v865_v5  ;;  %v864_v10 = vld.sshfl [vmem:[%s1380_s2] sm:$0x11 pattern:$0x76325410]  ;;  %s1049_s7 = smov 31  }
  0x3a   : > { %v272_v7 = vunpack.c.0.s8 %v271_v3  ;;  %v252_v11 = vcombine.high %v864_v10, %v864_v10  ;;  %v254_v12 = vpack.i.b16 %v864_v10, %v864_v10  ;;  %s1050_s6 = smov 49   ;;  %s1051_s8 = smov 127   ;;  %vm335_vm0 = vcmask 269312  }
  0x3b   : > { %v299_v4 = vsub.s32 1, %v1200_v1  ;;  %v258_v6 = vsub.s32 0, %v1200_v1  ;;  %v302_v14 = vpack.i.b16 %v293_v8, %v293_v8  ;;  %s1052_s9 = smov 111   ;;  %s1053_s10 = smov 15   ;;  %vm321_vm1 = vcmask 138240  }
  0x3c   : > { %v261_v16 = vpack.i.b16 %v252_v11, %v252_v11  ;;  %v1211_v17 = vsub.s32 %v272_v7, %v1200_v1  ;;  %s1054_s16 = smov 95   ;;  %vm342_vm2 = vcmask 384000   ;;  %vm328_vm3 = vcmask 252928   ;;  %s1055_s17 = smov 110  }
  0x3d   : > { %v300_v13 = vrot.slane %v295_v9, %v299_v4  ;;  %v259_v15 = vrot.slane %v254_v12, %v258_v6  ;;  %v307_v18 = vrot.slane %v302_v14, %v299_v4  ;;  %s1056_s23 = smov 126   ;;  %s1057_s11 = smov 96   ;;  %vm349_vm4 = vcmask 400384  }
  0x3e   : > { %v266_v19 = vrot.slane %v261_v16, %v258_v6  ;;  %v385_v26 = vrot.slane %v1214_v23, %v1211_v17  ;;  %v1222_v27 = vrot.slane %v371_v25, %v1211_v17  ;;  %v457_v31 = vrot.slane %v450_v30, %v1211_v17  ;;  %s1058_s12 = smov 112   ;;  %s1059_s14 = smov 94  }
  0x3f   : > { %v310_v20 = vcombine.low %v300_v13, %v307_v18  ;;  %vm280_vm5 = vcmask 121856   ;;  %vm558_vm6 = vcmask 1041408   ;;  %vm420_vm7 = vcmask 1031168   ;;  %s1060_s15 = smov 113   ;;  %p1393_p11 = scmp.ne.s32.totalorder %s1386_s29, 0 }
  0x40   : > { %v269_v21 = vcombine.low %v259_v15, %v266_v19  ;;  %v458_v28 = vcombine.high %v385_v26, %v385_v26  ;;  %v386_v29 = vcombine.high %v1222_v27, %v1222_v27  ;;  %v522_v32 = vcombine.low %v385_v26, %v385_v26 }
  0x41   : > { %v317_v22 = vrot.slane %v310_v20, %v1211_v17  ;;  %v521_v11 = vcombine.low %v1222_v27, %v1222_v27  ;;  %vm575_vm8 = vcmask 1045504   ;;  %vm393_vm9 = vcmask 1039360  }
  0x42   : > { %v276_v24 = vrot.slane %v269_v21, %v1211_v17  ;;  %vm568_vm10 = vcmask 1043456   ;;  %vm465_vm11 = vcmask 908288   ;;  %vm447_vm12 = vcmask 916480  }
  0x43   : > { %332 = vrot.lane.b32.xlu1 %v317_v22, %s1046_s28  ;;  %318 = vrot.lane.b32.xlu0 %v317_v22, %s1047_s25  ;;  %vm491_vm13 = vcmask 900096   ;;  %vm529_vm14 = vcmask 777216   ;;  %vm518_vm15 = vcmask 785408  }
  0x47   : > { %339 = vrot.lane.b32.xlu1 %v276_v24, %s1048_s26  ;;  %325 = vrot.lane.b32.xlu0 %v276_v24, %s1049_s7 }
  0x4b   : > { %346 = vrot.lane.b32.xlu0 %v317_v22, %s1050_s6  ;;  %391 = vrot.lane.b32.xlu1 %v385_v26, %s1051_s8 }
  0x4f   : > { %461 = vrot.lane.b32.xlu1 %v458_v28, %s1052_s9  ;;  %389 = vrot.lane.b32.xlu0 %v386_v29, %s1051_s8 }
  0x53   : > { %277 = vrot.lane.b32.xlu1 %v276_v24, %s1053_s10  ;;  %387 = vrot.lane.b32.xlu0 %v1222_v27, %s1051_s8  ;;  %s873_s10 = sshll.u32 %s1114_s22, 7  ;;  %s1062_s22 = smov [#allocation5]  }
  0x54   : > { %s980_s28 = sshll.u32 %s1062_s22, 4  ;;  %s981_s28 = int_to_ptr.vmem [resolvable:$false] %s980_s28 }
  0x55   : > { %s982_s25 = scalar_lea.vmem %s981_s28, 256 }
  0x57   : > { %459 = vrot.lane.b32.xlu1 %v385_v26, %s1052_s9  ;;  %463 = vrot.lane.b32.xlu0 %v457_v31, %s1052_s9  ;;  %s863_s9 = sshll.u32 %s1192_s13, 3 }
  0x5b   : > { %527 = vrot.lane.b32.xlu1 %v522_v32, %s1054_s16  ;;  %525 = vrot.lane.b32.xlu0 %v1222_v27, %s1054_s16 }
  0xb5   : > { %v333_v33 = vpop.permute.xlu1 %332  ;;  %v319_v34 = vpop.permute.xlu0 %318 }
  0xb6   : > { %v334_v35 = vrot.slane %v333_v33, 6  ;;  %v320_v36 = vrot.slane %v319_v34, 6 }
  0xb8   : > { %v336_v37 = vsel %vm335_vm0, %v334_v35, %v333_v33  ;;  %v322_v38 = vsel %vm321_vm1, %v320_v36, %v319_v34  ;;  %vm555_vm0 = vcmask 769024   ;;  %vm628_vm1 = vcmask 924672  }
  0xb9   : > { %v338_v39 = vmul.bf16 %v336_v37, %v1214_v23  ;;  %v324_v40 = vmul.bf16 %v322_v38, %v1214_v23  ;;  %v340_v41 = vpop.permute.xlu1 %339  ;;  %v326_v42 = vpop.permute.xlu0 %325 }
  0xba   : > { %v341_v43 = vrot.slane %v340_v41, 6  ;;  %v327_v44 = vrot.slane %v326_v42, 6 }
  0xbb   : > { %v483_v45 = vrot.slane %v338_v39, %v1211_v17  ;;  %v404_v46 = vrot.slane %v324_v40, %v1211_v17  ;;  %v469_v53 = vcombine.low %v338_v39, %v338_v39  ;;  %v397_v54 = vcombine.high %v324_v40, %v324_v40 }
  0xbc   : > { %v343_v47 = vsel %vm342_vm2, %v341_v43, %v340_v41  ;;  %v329_v48 = vsel %vm328_vm3, %v327_v44, %v326_v42  ;;  %vm639_vm2 = vcmask 293888  }
  0xbd   : > { %v345_v49 = vmul.bf16 %v343_v47, %v1214_v23  ;;  %v331_v50 = vmul.bf16 %v329_v48, %v1214_v23  ;;  %489 = vrot.lane.b32.xlu0 %v483_v45, %s1055_s17  ;;  %416 = vrot.lane.b32.xlu1 %v404_v46, %s1056_s23  ;;  %v412_v56 = vcombine.low %v404_v46, %v404_v46  ;;  %v347_v58 = vpop.permute.xlu0 %346  ;;  %v392_v14 = vpop.permute.xlu1 %391 }
  0xbe   : > { %v476_v59 = vrot.slane %v469_v53, %v1211_v17  ;;  %v411_v60 = vrot.slane %v397_v54, %v1211_v17  ;;  %v348_v61 = vrot.slane %v347_v58, 6 }
  0xbf   : > { %v424_v51 = vcombine.low %v331_v50, %v331_v50  ;;  %v502_v52 = vrot.slane %v345_v49, %v1211_v17  ;;  %v438_v57 = vrot.slane %v331_v50, %v1211_v17  ;;  %v495_v63 = vcombine.high %v345_v49, %v345_v49 }
  0xc0   : > { %v413_v0 = vcombine.low %v411_v60, %v411_v60  ;;  %v350_v2 = vsel %vm349_vm4, %v348_v61, %v347_v58  ;;  %v484_v7 = vcombine.high %v476_v59, %v476_v59 }
  0xc1   : > { %514 = vrot.lane.b32.xlu1 %v502_v52, %s1057_s11  ;;  %v431_v55 = vrot.slane %v424_v51, %v1211_v17  ;;  %v440_v62 = vcombine.low %v438_v57, %v438_v57  ;;  %v510_v3 = vcombine.low %v502_v52, %v502_v52  ;;  %v352_v4 = vmul.bf16 %v350_v2, %v1214_v23  ;;  %v462_v15 = vpop.permute.xlu1 %461  ;;  %v390_v16 = vpop.permute.xlu0 %389 }
  0xc2   : > { %v509_v6 = vrot.slane %v495_v63, %v1211_v17  ;;  %v395_v50 = vsel %vm393_vm9, %v390_v16, %v392_v14 }
  0xc3   : > { %443 = vrot.lane.b32.xlu0 %v431_v55, %s1058_s12  ;;  %v439_v5 = vcombine.low %v431_v55, %v431_v55  ;;  %v533_v8 = vcombine.high %v352_v4, %v352_v4  ;;  %v540_v10 = vrot.slane %v352_v4, %v1211_v17 }
  0xc4   : > { %v511_v9 = vcombine.low %v509_v6, %v509_v6 }
  0xc5   : > { %414 = vrot.lane.b32.xlu1 %v412_v56, %s1056_s23  ;;  %v547_v12 = vrot.slane %v533_v8, %v1211_v17  ;;  %v548_v13 = vcombine.high %v540_v10, %v540_v10  ;;  %v278_v18 = vpop.permute.xlu1 %277  ;;  %v388_v19 = vpop.permute.xlu0 %387 }
  0xc6   : > { %v279_v24 = vrot.slane %v278_v18, 6  ;;  %v394_v39 = vsel %vm393_vm9, %v388_v19, %v390_v16 }
  0xc7   : > { %485 = vrot.lane.b32.xlu0 %v476_v59, %s1055_s17 }
  0xc8   : > { %v281_v26 = vsel %vm280_vm5, %v279_v24, %v278_v18  ;;  %vm706_vm5 = vcmask 1042432  }
  0xc9   : > { %445 = vrot.lane.b32.xlu1 %v440_v62, %s1058_s12  ;;  %v460_v20 = vpop.permute.xlu1 %459  ;;  %v464_v21 = vpop.permute.xlu0 %463  ;;  %v283_v28 = vmul.bf16 %v281_v26, %v1214_v23 }
  0xca   : > { %v467_v51 = vsel %vm465_vm11, %v462_v15, %v464_v21  ;;  %v466_v58 = vsel %vm465_vm11, %v460_v20, %v462_v15 }
  0xcb   : > { %418 = vrot.lane.b32.xlu0 %v413_v0, %s1056_s23  ;;  %v354_v31 = vcombine.high %v283_v28, %v283_v28  ;;  %v361_v40 = vrot.slane %v283_v28, %v1211_v17 }
  0xcd   : > { %512 = vrot.lane.b32.xlu1 %v510_v3, %s1057_s11  ;;  %v528_v22 = vpop.permute.xlu1 %527  ;;  %v1257_v25 = vpop.permute.xlu0 %525  ;;  %v368_v34 = vrot.slane %v354_v31, %v1211_v17  ;;  %v561_v44 = vsel %vm558_vm6, %v361_v40, %v394_v39  ;;  %v369_v48 = vcombine.high %v361_v40, %v361_v40 }
  0xce   : > { %v531_v59 = vsel %vm529_vm14, %v1257_v25, %v528_v22 }
  0xcf   : > { %441 = vrot.lane.b32.xlu0 %v439_v5, %s1058_s12  ;;  %v567_v37 = vsel %vm558_vm6, %v368_v34, %v392_v14  ;;  %v564_v62 = vsel %vm558_vm6, %v369_v48, %v395_v50  ;;  %s1334_s12 = scalar_lea.hbm %s1383_s5, %s873_s10 }
  0xd1   : > { %487 = vrot.lane.b32.xlu1 %v484_v7, %s1055_s17 }
  0xd3   : > { %516 = vrot.lane.b32.xlu0 %v511_v9, %s1057_s11 }
  0xd5   : > { %549 = vrot.lane.b32.xlu1 %v540_v10, %s1059_s14 }
  0xd7   : > { %523 = vrot.lane.b32.xlu0 %v521_v11, %s1054_s16  ;;  %v1061_v11 = vmov 0   ;;  %s240_s16 = scalar_lea.vmem [#allocation5], %s863_s9 }
  0xd8   : > { %681 = vmatprep.mubr.bf16.mxu0 %v1061_v11  ;;  %940 = vset.pattern.permute.xlu0 %v1061_v11  ;;  %s788_s17 = sshll.u32 %s240_s16, 4  ;;  %s1336_s17 = int_to_ptr.vmem [resolvable:$true] %s788_s17 }
  0xd9   : > { %553 = vrot.lane.b32.xlu1 %v547_v12, %s1059_s14  ;;  %p983_p5 = scmp.lt.s32.totalorder %s1336_s17, %s981_s28 }
  0xda   : > { %941 = vset.pattern.permute.xlu1 %v1061_v11 }
  0xdb   : > { %551 = vrot.lane.b32.xlu0 %v548_v13, %s1059_s14  ;;  %s774_s14 = scalar_lea.sflag [#allocation4], %s1192_s13 }
 0x12f   : > { %v417_v27 = vpop.permute.xlu1 %416  ;;  %v490_v29 = vpop.permute.xlu0 %489 }
 0x130   : > { %v590_v54 = vsel %vm558_vm6, %v464_v21, %v490_v29 }
 0x133   : > { %v515_v30 = vpop.permute.xlu1 %514 }
 0x135   : > { %v444_v32 = vpop.permute.xlu0 %443 }
 0x137   : > { %v415_v33 = vpop.permute.xlu1 %414 }
 0x138   : > { %v421_v41 = vsel %vm420_vm7, %v415_v33, %v417_v27 }
 0x139   : > { %v486_v35 = vpop.permute.xlu0 %485  ;;  %v570_v47 = vsel %vm568_vm10, %v561_v44, %v421_v41 }
 0x13b   : > { %v446_v36 = vpop.permute.xlu1 %445 }
 0x13c   : > { %v449_v8 = vsel %vm447_vm12, %v444_v32, %v446_v36 }
 0x13d   : > { %v419_v38 = vpop.permute.xlu0 %418 }
 0x13e   : > { %v574_v23 = vsel %vm568_vm10, %v567_v37, %v419_v38  ;;  %v422_v55 = vsel %vm420_vm7, %v417_v27, %v419_v38 }
 0x13f   : > { %v513_v42 = vpop.permute.xlu1 %512  ;;  %v581_v43 = vsel %vm575_vm8, %v574_v23, %v446_v36  ;;  %v572_v5 = vsel %vm568_vm10, %v564_v62, %v422_v55  ;;  %v603_v36 = vld [vmem:[%s1379_s1] sm:$0x3] }
 0x140   : > { %614 = vrot.lane.b32.xlu1 %v581_v43, %s1060_s15  ;;  %v519_v6 = vsel %vm518_vm15, %v513_v42, %v515_v30  ;;  %v579_v12 = vsel %vm575_vm8, %v572_v5, %v449_v8 }
 0x141   : > { %v442_v45 = vpop.permute.xlu0 %441 }
 0x142   : > { %v448_v46 = vsel %vm447_vm12, %v442_v45, %v444_v32 }
 0x143   : > { %v488_v17 = vpop.permute.xlu1 %487  ;;  %v577_v49 = vsel %vm575_vm8, %v570_v47, %v448_v46  ;;  %v716_v47 = vand.u32 1, %v1200_v1 }
 0x144   : > { %v492_v52 = vsel %vm491_vm13, %v486_v35, %v488_v17  ;;  %v493_v53 = vsel %vm491_vm13, %v488_v17, %v490_v29  ;;  %610 = vrot.lane.b32.xlu0 %v577_v49, %s1060_s15 }
 0x145   : > { %v587_v56 = vsel %vm558_vm6, %v467_v51, %v493_v53  ;;  %v517_v57 = vpop.permute.xlu0 %516  ;;  %v584_v63 = vsel %vm558_vm6, %v466_v58, %v492_v52  ;;  %vm1309_vm7 = vcmp.eq.s32.totalorder %v716_v47, 0 }
 0x146   : > { %v520_v60 = vsel %vm518_vm15, %v515_v30, %v517_v57  ;;  %v596_v61 = vsel %vm568_vm10, %v590_v54, %v517_v57  ;;  %v592_v10 = vsel %vm568_vm10, %v584_v63, %v519_v6 }
 0x147   : > { %v550_v0 = vpop.permute.xlu1 %549  ;;  %v602_v2 = vsel %vm575_vm8, %v596_v61, %v528_v22  ;;  %v594_v3 = vsel %vm568_vm10, %v587_v56, %v520_v60 }
 0x148   : > { %620 = vrot.lane.b32.xlu0 %v602_v2, %s1060_s15  ;;  %v600_v4 = vsel %vm575_vm8, %v594_v3, %v531_v59  ;;  %v760_v2 = vld [vmem:[%s1382_s4] sm:$0xf] }
 0x149   : > { %618 = vrot.lane.b32.xlu1 %v600_v4, %s1060_s15  ;;  %v524_v7 = vpop.permute.xlu0 %523 }
 0x14a   : > { %v530_v9 = vsel %vm529_vm14, %v524_v7, %v1257_v25 }
 0x14b   : > { %v598_v13 = vsel %vm575_vm8, %v592_v10, %v530_v9  ;;  %v554_v14 = vpop.permute.xlu1 %553 }
 0x14c   : > { %612 = vrot.lane.b32.xlu0 %v579_v12, %s1060_s15 }
 0x14d   : > { %616 = vrot.lane.b32.xlu1 %v598_v13, %s1060_s15  ;;  %v552_v15 = vpop.permute.xlu0 %551 }
 0x14e   : > { %v556_v16 = vsel %vm555_vm0, %v550_v0, %v552_v15  ;;  %v557_v18 = vsel %vm555_vm0, %v552_v15, %v554_v14 }
 0x150   : > { %622 = vrot.lane.b32.xlu0 %v556_v16, %s1060_s15 }
 0x151   : > { %624 = vrot.lane.b32.xlu1 %v557_v18, %s1060_s15 }
 0x154   : > { %626 = vrot.lane.b32.xlu0 %v554_v14, %s1060_s15  ;;  %v751_v14 = vld [vmem:[%s1381_s3] sm:$0xf]  ;;  %s976_s15 = scalar_lea.vmem %s1336_s17, 128 }
 0x155   : > { %p977_p6 = scmp.ne.s32.totalorder %s1336_s17, %s976_s15  ;;  %p984_p10 = scmp.lt.s32.totalorder %s982_s25, %s976_s15 }
 0x157   : > { %p978_p12 = pnand %p977_p6, %p1393_p11  ;;  %p985_p2 = por %p984_p10, %p983_p5 }
 0x159   : > { %p979_p13 = pneg %p978_p12 }
 0x15b   : > { %p986_p4 = pnand %p985_p2, %p979_p13 }
 0x1b2   : > { %v615_v20 = vpop.permute.xlu1 %614 }
 0x1b6   : > { %v611_v19 = vpop.permute.xlu0 %610 }
 0x1ba   : > { %v621_v21 = vpop.permute.xlu0 %620 }
 0x1bb   : > { %v619_v22 = vpop.permute.xlu1 %618 }
 0x1bc   : > { %v632_v28 = vsel %vm628_vm1, %v619_v22, %v621_v21 }
 0x1be   : > { %v613_v24 = vpop.permute.xlu0 %612 }
 0x1bf   : > { %v617_v25 = vpop.permute.xlu1 %616  ;;  %v630_v26 = vsel %vm628_vm1, %v613_v24, %v615_v20  ;;  %v629_v27 = vsel %vm628_vm1, %v611_v19, %v613_v24 }
 0x1c0   : > { %649 = vmatprep.subr.bf16.mxu0 %v630_v26  ;;  %v631_v31 = vsel %vm628_vm1, %v617_v25, %v619_v22 }
 0x1c1   : > { %650 = vmatpush1.bf16.msra.mxu0 %v629_v27 }
 0x1c2   : > { %651 = vmatprep.subr.bf16.mxu0 %v632_v28  ;;  %v623_v29 = vpop.permute.xlu0 %622 }
 0x1c3   : > { %v625_v30 = vpop.permute.xlu1 %624 }
 0x1c4   : > { %v633_v32 = vsel %vm628_vm1, %v623_v29, %v625_v30 }
 0x1c5   : > { %652 = vmatpush1.bf16.msra.mxu0 %v631_v31  ;;  %v644_v35 = vsel %vm558_vm6, %v633_v32, 0 }
 0x1c6   : > { %v627_v33 = vpop.permute.xlu0 %626 }
 0x1c7   : > { %v634_v34 = vsel %vm628_vm1, %v625_v30, %v627_v33 }
 0x1c8   : > { %866 = vmatprep.subr.msk.bf16.mxu0 %vm558_vm6, %v634_v34  ;;  %vm712_vm6 = vcmask 1040384  }
 0x1c9   : > { %654 = vmatpush1.bf16.msra.mxu0 %v644_v35 }
 0x1cc   : > { %867 = vmatmul.mubr.msk.bf16.vlgmr.msra.gmra.mrb[0].mxu0 %vm639_vm2, %v603_v36 }
 0x29f   : > { %v683_v37 = vpop.f32.mrb[0].mxu0 }
 0x2a0   : > { %vm690_vm3 = vcmp.gt.f32.partialorder %v683_v37, 0.0  ;;  %v692_v38 = vmul.f32 0.01, %v683_v37  ;;  %v685_v39 = vpop.f32.mrb[1].mxu0 }
 0x2a1   : > { %vm691_vm4 = vcmp.gt.f32.partialorder %v685_v39, 0.0  ;;  %v693_v23 = vmul.f32 0.01, %v685_v39  ;;  %v687_v40 = vpop.f32.mrb[2].mxu0 }
 0x2a2   : > { %v688_v41 = vpop.f32.mrb[3].mxu0  ;;  %v694_v42 = vsel %vm690_vm3, %v683_v37, %v692_v38 }
 0x2a3   : > { %v695_v43 = vsel %vm691_vm4, %v685_v39, %v693_v23  ;;  %v696_v44 = vsel %vm568_vm10, %v694_v42, 0.0 }
 0x2a4   : > { %v697_v45 = vsel %vm568_vm10, %v695_v43, 0.0 }
 0x2a5   : > { %v698_v46 = vadd.f32 %v697_v45, %v696_v44 }
 0x2a7   : > { %699 = vadd.xlane.f32.xlu1 %v698_v46 }
 0x334   : > { %v700_v48 = vpop.xlane.xlu1 %699 }
 0x335   : > { %v702_v49 = vrot.slane %v700_v48, 1  ;;  %v704_v50 = vrot.slane %v700_v48, 5  ;;  %v708_v51 = vrot.slane %v700_v48, 3  ;;  %v710_v52 = vrot.slane %v700_v48, 7 }
 0x337   : > { %v707_v53 = vsel %vm706_vm5, %v702_v49, %v704_v50  ;;  %v713_v54 = vsel %vm712_vm6, %v708_v51, %v710_v52 }
 0x338   : > { %v718_v55 = vsel %vm1309_vm7, %v707_v53, %v713_v54 }
 0x339   : > { %v719_v56 = vadd.f32 %v718_v55, %v700_v48 }
 0x33b   : > { %v720_v1 = vmul.f32 0.001953125, %v719_v56 }
 0x33d   : > { %723 = vperm.xlu0 %940, %v720_v1  }
 0x3bc   : > { %v724_v57 = vpop.permute.xlu0 %723 }
 0x3bd   : > { %v726_v58 = vsub.f32 %v694_v42, %v724_v57  ;;  %v727_v59 = vsub.f32 %v695_v43, %v724_v57 }
 0x3bf   : > { %v728_v60 = vmul.f32 %v726_v58, %v726_v58  ;;  %v729_v61 = vmul.f32 %v727_v59, %v727_v59 }
 0x3c1   : > { %v730_v62 = vsel %vm568_vm10, %v728_v60, 0.0  ;;  %v731_v63 = vsel %vm568_vm10, %v729_v61, 0.0 }
 0x3c2   : > { %v732_v0 = vadd.f32 %v731_v63, %v730_v62 }
 0x3c4   : > { %733 = vadd.xlane.f32.xlu0 %v732_v0 }
 0x3da   : > { %763 = vperm.xlu0 %940, %v760_v2  }
 0x451   : > { %v734_v3 = vpop.xlane.xlu0 %733 }
 0x452   : > { %v736_v4 = vrot.slane %v734_v3, 1  ;;  %v738_v5 = vrot.slane %v734_v3, 5  ;;  %v741_v6 = vrot.slane %v734_v3, 3  ;;  %v743_v7 = vrot.slane %v734_v3, 7 }
 0x454   : > { %v740_v8 = vsel %vm706_vm5, %v736_v4, %v738_v5  ;;  %v745_v9 = vsel %vm712_vm6, %v741_v6, %v743_v7 }
 0x455   : > { %v746_v10 = vsel %vm1309_vm7, %v740_v8, %v745_v9 }
 0x456   : > { %v747_v11 = vadd.f32 %v746_v10, %v734_v3 }
 0x458   : > { %v748_v12 = vmul.f32 0.001953125, %v747_v11 }
 0x459   : > { %v764_v21 = vpop.permute.xlu0 %763 }
 0x45a   : > { %v749_v13 = vadd.f32 0.001, %v748_v12 }
 0x45c   : > { %944 = vrsqrt.f32 %v749_v13 }
 0x466   : > { %v945_v15 = vpop.eup %944 }
 0x467   : > { %v752_v16 = vmul.f32 %v945_v15, %v751_v14 }
 0x469   : > { %755 = vperm.xlu1 %941, %v752_v16  }
 0x4e8   : > { %v756_v18 = vpop.permute.xlu1 %755 }
 0x4e9   : > { %v758_v19 = vmul.f32 %v756_v18, %v726_v58  ;;  %v759_v20 = vmul.f32 %v756_v18, %v727_v59 }
 0x4eb   : > { %v766_v22 = vadd.f32 %v764_v21, %v758_v19  ;;  %v767_v24 = vadd.f32 %v764_v21, %v759_v20 }
 0x4ed   : > { %v770_v25 = vcombine.low %v766_v22, %v767_v24 }
 0x4ef   : > { %772 = vst [vmem:[%s240_s16] sm:$0xff] %v770_v25 }
 0x4f0   : > { %989 = shalt.err (!%p986_p4)
}
 0x4f1   : > { %s990_s13 = scalar_lea.hbm %s1334_s12, 128  ;;  %s994_s6 = scalar_lea.hbm %s1383_s5, 256 }
 0x4f2   : > { %p991_p7 = scmp.ne.s32.totalorder %s1334_s12, %s990_s13  ;;  %p995_p0 = scmp.lt.u32.totalorder %s1334_s12, %s1383_s5 }
 0x4f3   : > { %p996_p1 = scmp.lt.u32.totalorder %s994_s6, %s990_s13  ;;  %p998_p6 = scmp.lt.u32.totalorder %s990_s13, %s1334_s12 }
 0x4f4   : > { %p992_p8 = pnand %p991_p7, %p1393_p11 }
 0x4f5   : > { %p997_p3 = por %p996_p1, %p995_p0 }
 0x4f6   : > { %p993_p9 = pneg %p992_p8 }
 0x4f7   : > { %p999_p12 = por %p998_p6, %p997_p3 }
 0x4f9   : > { %p1000_p13 = pnand %p999_p12, %p993_p9 }
 0x4fb   : > { %1003 = shalt.err (!%p1000_p13)
}
 0x4fc   : > { %879 = dma.vmem_to_hbm [thread:$0]  (%p1393_p11), %s1336_s17, 128, %s1334_s12, %s774_s14  }
 0x4fd PF: > { %s800_s10 = sand.u32 1, %s1030_s18   ;;  %p1394_p5 = scmp.ne.s32.totalorder %s1387_s30, 0 }
 0x4fe   : > { %p1395_p10 = scmp.ge.s32.totalorder %s1042_s21, 2  ;;  %s801_s16 = scalar_lea.sflag [#allocation4], %s800_s10 }
 0x500   : > { %p886_p2 = pnand %p1395_p10, %p1394_p5 }
 0x502   : > { %1025 = dma.done.wait (!%p886_p2), %s801_s16, 128  }
 0x503   : > { %1027 = vsyncadd (!%p886_p2), %s801_s16, 4294967168  ;;  %p18_p4 = scmp.ge.s32.totalorder %s1118_s24, 4   ;;  %s1396_s18 = smov %s1034_s19 }
 0x504   : > { %s1397_s19 = smov %s1038_s20  ;;  %s1398_s20 = smov %s1130_s27 }
 0x505   : > { %s1399_s21 = smov %s1118_s24  ;;  %20 = sbr.rel (!%p18_p4) target bundleno = 5 (0x5), region = 85 }
 0x50c   :  { %806 = vsyncpa [#allocation3], 1 }
 0x50d   :  { %808 = vsyncpa [#allocation3 + $0x1], 1 }
 0x50e   :  { %809 = vsyncpa [#allocation4], 1 }
 0x50f   :  { %811 = vsyncpa [#allocation4 + $0x1], 1 }

</bundles_post_ra>
